<compile_context>
chip_gen: v6e
topology: v6e:2x2x1
jax: 0.10.0
libtpu: 0.0.40
codegen_flags: <defaults>
</compile_context>

<pallas_src>
import functools

import jax
import jax.numpy as jnp
from jax import lax
from jax.experimental import pallas as pl
from jax.experimental.pallas import tpu as pltpu


_TARGET_STEPS = 4                          # >= 2 pipeline steps per TC on v7x
_MIN_BLOCK_BYTES = 1 * 1024 * 1024         # don't shrink batch blocks below ~1 MiB
_MAX_UNPIPELINED_BYTES = 8 * 1024 * 1024   # tolerated size for a single-step grid


def _vmem_budgets():
    """Generation-aware (scoped-VMEM limit, data budget) in bytes."""
    try:
        cap = int(pltpu.get_tpu_info().vmem_capacity_bytes)
    except Exception:                       # unknown device / interpret mode
        cap = 64 * 1024 * 1024              # conservative: v7x per-TC capacity
    limit = cap - 16 * 1024 * 1024          # headroom for Mosaic-internal scratch
    data = limit - 16 * 1024 * 1024         # budget for double-buffered in/out blocks
    return max(limit, 16 * 1024 * 1024), max(data, 8 * 1024 * 1024)


def _excite(pooled, w1, w2):
    """Batched excitation: Linear(no bias) -> ReLU -> Linear(no bias) -> Sigmoid.

    pooled: (Bblk, C) f32; w1: (Cr, C), w2: (C, Cr) in PyTorch (out, in) layout.
    (1/HW of the average pool is folded into w1 by the wrapper.)
    """
    h = lax.dot_general(pooled, w1, (((1,), (1,)), ((), ())),
                        preferred_element_type=jnp.float32)        # (Bblk, Cr)
    h = jnp.maximum(h, 0.0)
    y = lax.dot_general(h, w2, (((1,), (1,)), ((), ())),
                        preferred_element_type=jnp.float32)        # (Bblk, C)
    return jax.nn.sigmoid(y)


# ---------------------------------------------------------------------------
# Single-pass kernel: whole (Bblk, C, HW) slab per grid step.
# ---------------------------------------------------------------------------
def _se_fused_kernel(x_ref, w1_ref, w2_ref, o_ref):
    x = x_ref[...]                                                  # native dtype
    pooled = jnp.sum(x, axis=-1, dtype=jnp.float32)                 # (Bblk, C) f32
    gate = _excite(pooled, w1_ref[...], w2_ref[...])                # (Bblk, C) f32
    # Scale in the input dtype (no full-slab f32 temporary).
    o_ref[...] = (x * gate[:, :, None].astype(x.dtype)).astype(o_ref.dtype)


# ---------------------------------------------------------------------------
# Two-pass HW-tiled fallback (C*HW slab too large for VMEM, e.g. on v7x).
# ---------------------------------------------------------------------------
def _se_pool_kernel(x_ref, w1_ref, w2_ref, gate_ref, *, hw, hw_t, needs_mask):
    s = pl.program_id(1)

    @pl.when(s == 0)
    def _():
        gate_ref[...] = jnp.zeros_like(gate_ref)

    x = x_ref[...]                                                  # (1, C, hw_t)
    if needs_mask:
        # Last tile of a ragged HW holds unspecified padding -> mask it out.
        lane = s * hw_t + lax.broadcasted_iota(jnp.int32, x.shape, 2)
        x = jnp.where(lane < hw, x, 0)
    gate_ref[...] += jnp.sum(x, axis=-1, keepdims=True, dtype=jnp.float32)

    @pl.when(s == pl.num_programs(1) - 1)
    def _():
        pooled = gate_ref[...][:, :, 0]                             # (1, C) f32 sum
        gate_ref[...] = _excite(pooled, w1_ref[...], w2_ref[...])[:, :, None]


def _se_scale_kernel(x_ref, gate_ref, o_ref):
    x = x_ref[...]
    o_ref[...] = (x * gate_ref[...].astype(x.dtype)).astype(o_ref.dtype)


def _pick_hw_tile(hw, cap_elems):
    """Lane-dense (multiple-of-128) HW tile; grid uses cdiv + a masked tail."""
    if cap_elems >= hw:
        return hw
    t = max(128, (cap_elems // 128) * 128)
    hw_pad = -(-hw // 128) * 128
    return min(t, hw_pad)


# ---------------------------------------------------------------------------
# Public wrapper
# ---------------------------------------------------------------------------
def se_block(x, w1, w2, *, data_budget_bytes=None):
    """SEBlock forward.  x: (B, C, H, W); w1: (C//r, C); w2: (C, C//r) (PyTorch layout)."""
    B, C, H, W = x.shape
    cr = w1.shape[0]
    HW = H * W
    itemsize = jnp.dtype(x.dtype).itemsize
    w_itemsize = jnp.dtype(w1.dtype).itemsize
    x3 = x.reshape(B, C, HW)
    per_b_bytes = C * HW * itemsize

    vmem_limit, data_budget = _vmem_budgets()
    if data_budget_bytes is not None:
        data_budget = data_budget_bytes

    # Weights stay resident (double-buffered) across all grid steps.
    w_bytes = 2 * 2 * C * cr * w_itemsize
    usable = max(0, data_budget - w_bytes)

    # Fold the 1/HW of the average pool into the first excitation weight
    # (exact: the first Linear is linear in its input).
    w1 = w1 * (1.0 / HW)

    # ---- single-pass path: whole (Bblk, C, HW) slab per grid step ----------
    max_bblk = usable // (4 * per_b_bytes)     # in + out blocks, double-buffered
    use_single = max_bblk >= 1
    bblk = steps = None
    if use_single:
        bblk = int(min(B, max_bblk))
        if B > 1:
            steps_cap = -(-B // _TARGET_STEPS)                       # aim for >=4 steps
            size_floor = max(1, -(-_MIN_BLOCK_BYTES // per_b_bytes))  # but keep >=1 MiB blocks
            bblk = max(1, min(bblk, max(steps_cap, size_floor)))
        steps = -(-B // bblk)
        if steps == 1 and bblk * per_b_bytes > _MAX_UNPIPELINED_BYTES:
            # One grid step cannot pipeline DMA against compute (and only one
            # v7x TensorCore would work): stream it through the HW-tiled path.
            # TODO(synk): an inner pltpu.emit_pipeline over HW tiles would keep
            # this B=1 large-slab case at 2x (not 3x) HBM traffic.
            use_single = False

    if use_single:
        cost = pl.CostEstimate(
            flops=2 * B * C * HW + 4 * B * C * cr,
            transcendentals=B * C,
            bytes_accessed=2 * B * C * HW * itemsize + 2 * C * cr * w_itemsize,
        )
        out = pl.pallas_call(
            _se_fused_kernel,
            out_shape=jax.ShapeDtypeStruct((B, C, HW), x.dtype),
            grid=(steps,),
            in_specs=[
                pl.BlockSpec((bblk, C, HW), lambda b: (b, 0, 0)),
                pl.BlockSpec((cr, C), lambda b: (0, 0)),
                pl.BlockSpec((C, cr), lambda b: (0, 0)),
            ],
            out_specs=pl.BlockSpec((bblk, C, HW), lambda b: (b, 0, 0)),
            compiler_params=pltpu.CompilerParams(
                dimension_semantics=("parallel",),
                vmem_limit_bytes=vmem_limit),
            cost_estimate=cost,
        )(x3, w1, w2)
        return out.reshape(B, C, H, W)

    # ---- two-pass HW-tiled fallback ----------------------------------------
    hw_cap = max(128, usable // (4 * C * itemsize))
    hw_t = _pick_hw_tile(HW, hw_cap)
    n_s = -(-HW // hw_t)
    needs_mask = (HW % hw_t) != 0

    gates = pl.pallas_call(
        functools.partial(_se_pool_kernel, hw=HW, hw_t=hw_t, needs_mask=needs_mask),
        out_shape=jax.ShapeDtypeStruct((B, C, 1), jnp.float32),
        grid=(B, n_s),
        in_specs=[
            pl.BlockSpec((1, C, hw_t), lambda b, s: (b, 0, s)),
            pl.BlockSpec((cr, C), lambda b, s: (0, 0)),
            pl.BlockSpec((C, cr), lambda b, s: (0, 0)),
        ],
        out_specs=pl.BlockSpec((1, C, 1), lambda b, s: (b, 0, 0)),
        compiler_params=pltpu.CompilerParams(
            dimension_semantics=("parallel", "arbitrary"),
            vmem_limit_bytes=vmem_limit),
        cost_estimate=pl.CostEstimate(
            flops=B * C * HW + 4 * B * C * cr,
            transcendentals=B * C,
            bytes_accessed=B * C * HW * itemsize + 2 * C * cr * w_itemsize),
    )(x3, w1, w2)

    out = pl.pallas_call(
        _se_scale_kernel,
        out_shape=jax.ShapeDtypeStruct((B, C, HW), x.dtype),
        grid=(B, n_s),
        in_specs=[
            pl.BlockSpec((1, C, hw_t), lambda b, s: (b, 0, s)),
            pl.BlockSpec((1, C, 1), lambda b, s: (b, 0, 0)),
        ],
        out_specs=pl.BlockSpec((1, C, hw_t), lambda b, s: (b, 0, s)),
        compiler_params=pltpu.CompilerParams(
            dimension_semantics=("parallel", "parallel"),
            vmem_limit_bytes=vmem_limit),
        cost_estimate=pl.CostEstimate(
            flops=B * C * HW,
            transcendentals=0,
            bytes_accessed=2 * B * C * HW * itemsize + B * C * 4),
    )(x3, gates)
    return out.reshape(B, C, H, W)


def se_block_ref(x, w1, w2):
    """Pure-JAX reference matching the PyTorch SEBlock.forward."""
    pooled = jnp.mean(x, axis=(2, 3))                 # (B, C)
    h = jnp.maximum(pooled @ w1.T, 0.0)               # (B, C//r)
    y = jax.nn.sigmoid(h @ w2.T)                      # (B, C)
    return x * y[:, :, None, None]


if __name__ == "__main__":
    key = jax.random.PRNGKey(0)

    def make(B, C, H, W, reduction):
        Cr = max(1, C // reduction)
        kx, k1, k2 = jax.random.split(jax.random.fold_in(key, B * 1000 + C + H), 3)
        x = jax.random.normal(kx, (B, C, H, W), dtype=jnp.float32)
        w1 = jax.random.normal(k1, (Cr, C), dtype=jnp.float32) * 0.1   # (out, in)
        w2 = jax.random.normal(k2, (C, Cr), dtype=jnp.float32) * 0.1   # (out, in)
        return x, w1, w2

    # Case 1: SEBlock(channel=32, reduction=16) at a lane-dense spatial size (H*W=256).
    x, w1, w2 = make(2, 32, 16, 16, 16)
    out = jax.block_until_ready(se_block(x, w1, w2))
    ref = se_block_ref(x, w1, w2)
    assert out.shape == x.shape
    assert jnp.allclose(out, ref, atol=1e-5, rtol=1e-5), "single-pass mismatch"

    # Case 2: multiple batch elements per grid step (batched excitation matmul).
    x, w1, w2 = make(8, 64, 16, 16, 16)
    out = jax.block_until_ready(se_block(x, w1, w2))
    ref = se_block_ref(x, w1, w2)
    assert jnp.allclose(out, ref, atol=1e-5, rtol=1e-5), "batched mismatch"

    # Case 3: force the HW-tiled two-pass path (tiny budget) with HW % 128 == 0.
    x, w1, w2 = make(2, 32, 16, 16, 16)
    out = jax.block_until_ready(se_block(x, w1, w2, data_budget_bytes=64 * 1024))
    ref = se_block_ref(x, w1, w2)
    assert jnp.allclose(out, ref, atol=1e-5, rtol=1e-5), "two-pass mismatch"

    # Case 4: force the two-pass path with a ragged HW (400 = 3*128 + 16) to
    # exercise the lane-dense cdiv grid + masked-tail pooling.
    x, w1, w2 = make(2, 32, 20, 20, 16)
    out = jax.block_until_ready(se_block(x, w1, w2, data_budget_bytes=64 * 1024))
    ref = se_block_ref(x, w1, w2)
    assert jnp.allclose(out, ref, atol=1e-5, rtol=1e-5), "ragged two-pass mismatch"

    print("KERNEL_OK")
</pallas_src>

<mosaic_0001>
module attributes {stable_mosaic.version = 11 : i64} {
  func.func @_se_fused_kernel(%arg0: i32, %arg1: memref<2x32x256xf32, #tpu.memory_space<vmem>>, %arg2: memref<2x32xf32, #tpu.memory_space<vmem>>, %arg3: memref<32x2xf32, #tpu.memory_space<vmem>>, %arg4: memref<2x32x256xf32, #tpu.memory_space<vmem>>) attributes {dimension_semantics = [#tpu.dimension_semantics<parallel>], iteration_bounds = array<i64: 1>, scalar_prefetch = 0 : i64, scratch_operands = 0 : i64, tpu.core_type = #tpu.core_type<tc>, window_params = [{transform_indices = @transform_0, window_bounds = array<i64: 2, 32, 256>}, {pipeline_mode = #tpu.pipeline_mode<synchronous>, transform_indices = @transform_1, window_bounds = array<i64: 2, 32>}, {pipeline_mode = #tpu.pipeline_mode<synchronous>, transform_indices = @transform_2, window_bounds = array<i64: 32, 2>}, {transform_indices = @transform_3, window_bounds = array<i64: 2, 32, 256>}]} {
    %c0 = arith.constant 0 : index
    %c0_0 = arith.constant 0 : index
    %c0_1 = arith.constant 0 : index
    %0 = vector.load %arg1[%c0, %c0_0, %c0_1] : memref<2x32x256xf32, #tpu.memory_space<vmem>>, vector<2x32x256xf32>
    %cst = arith.constant dense<0.000000e+00> : vector<2x32xf32>
    %1 = vector.multi_reduction <add>, %0, %cst [2] : vector<2x32x256xf32> to vector<2x32xf32>
    %c0_2 = arith.constant 0 : index
    %c0_3 = arith.constant 0 : index
    %2 = vector.load %arg2[%c0_2, %c0_3] : memref<2x32xf32, #tpu.memory_space<vmem>>, vector<2x32xf32>
    %c0_4 = arith.constant 0 : index
    %c0_5 = arith.constant 0 : index
    %3 = vector.load %arg3[%c0_4, %c0_5] : memref<32x2xf32, #tpu.memory_space<vmem>>, vector<32x2xf32>
    %cst_6 = arith.constant dense<0.000000e+00> : vector<2x2xf32>
    %4 = tpu.matmul %1, %2, %cst_6 {dimension_numbers = #tpu.dot_dimension_numbers<[1], [1], [0], [0], [0, 0, 1, 0], [], []>} : vector<2x32xf32>, vector<2x32xf32>, vector<2x2xf32> -> vector<2x2xf32>
    %cst_7 = arith.constant 0.000000e+00 : f32
    %5 = vector.broadcast %cst_7 : f32 to vector<2x2xf32>
    %6 = arith.maximumf %4, %5 : vector<2x2xf32>
    %cst_8 = arith.constant dense<0.000000e+00> : vector<2x32xf32>
    %7 = tpu.matmul %6, %3, %cst_8 {dimension_numbers = #tpu.dot_dimension_numbers<[1], [1], [0], [0], [0, 0, 1, 0], [], []>} : vector<2x2xf32>, vector<32x2xf32>, vector<2x32xf32> -> vector<2x32xf32>
    %8 = arith.negf %7 : vector<2x32xf32>
    %9 = math.exp %8 : vector<2x32xf32>
    %cst_9 = arith.constant 1.000000e+00 : f32
    %10 = vector.broadcast %cst_9 : f32 to vector<2x32xf32>
    %11 = arith.addf %10, %9 : vector<2x32xf32>
    %12 = arith.divf %10, %11 : vector<2x32xf32>
    %13 = vector.shape_cast %12 : vector<2x32xf32> to vector<2x32x1xf32>
    %14 = vector.broadcast %13 : vector<2x32x1xf32> to vector<2x32x256xf32>
    %15 = arith.mulf %0, %14 : vector<2x32x256xf32>
    %c0_10 = arith.constant 0 : index
    %c0_11 = arith.constant 0 : index
    %c0_12 = arith.constant 0 : index
    %16 = vector.load %arg4[%c0_10, %c0_11, %c0_12] : memref<2x32x256xf32, #tpu.memory_space<vmem>>, vector<2x32x256xf32>
    tpu.vector_store %arg4[%c0_10, %c0_11, %c0_12], %15 {strides = array<i32>} : memref<2x32x256xf32, #tpu.memory_space<vmem>>, vector<2x32x256xf32>,
    return
  }
  func.func @transform_0(%arg0: i32) -> (i32, i32, i32) {
    %c0_i32 = arith.constant 0 : i32
    %c0_i32_0 = arith.constant 0 : i32
    %c0_i32_1 = arith.constant 0 : i32
    return %arg0, %c0_i32, %c0_i32_0 : i32, i32, i32
  }
  func.func @transform_1(%arg0: i32) -> (i32, i32) {
    %c0_i32 = arith.constant 0 : i32
    %c0_i32_0 = arith.constant 0 : i32
    %c0_i32_1 = arith.constant 0 : i32
    return %c0_i32, %c0_i32_0 : i32, i32
  }
  func.func @transform_2(%arg0: i32) -> (i32, i32) {
    %c0_i32 = arith.constant 0 : i32
    %c0_i32_0 = arith.constant 0 : i32
    %c0_i32_1 = arith.constant 0 : i32
    return %c0_i32, %c0_i32_0 : i32, i32
  }
  func.func @transform_3(%arg0: i32) -> (i32, i32, i32) {
    %c0_i32 = arith.constant 0 : i32
    %c0_i32_0 = arith.constant 0 : i32
    %c0_i32_1 = arith.constant 0 : i32
    return %arg0, %c0_i32, %c0_i32_0 : i32, i32, i32
  }
}

</mosaic_0001>

<bundles_post_ra>
// kernel: tpu_custom_call.1
= control target key start
LH: loop header
LB: loop body
LE: loop exit
PB: predicated region body
PF: predicated region fallthrough
CT: control target
= control target key end

     0   :  { %8 = vsyncpa [#allocation3], 0  ;;  %s595_s0 = inlined_call_operand.hbm [shape: f32[2,32,256], index: 0, kind: input, shape index: {}]   ;;  %s596_s1 = inlined_call_operand.vmem [shape: f32[2,32], index: 1, kind: input, shape index: {}]   ;;  %s597_s2 = inlined_call_operand.vmem [shape: f32[32,2], index: 2, kind: input, shape index: {}]   ;;  %s598_s3 = inlined_call_operand.hbm [shape: f32[2,32,256], index: 3, kind: output, shape index: {}]  }
   0x1   :  { %9 = vsyncpa [#allocation4], 0  ;;  %s471_s12 = smov [#allocation2]  }
   0x2   :  { %s15_s13 = sshll.u32 %s471_s12, 4  ;;  %s16_s13 = int_to_ptr.vmem [resolvable:$true] %s15_s13 }
   0x3   :  { %s435_s14 = scalar_lea.vmem %s16_s13, 2048  ;;  %p440_p1 = scmp.lt.s32.totalorder %s16_s13, %s16_s13 }
   0x4   :  { %p436_p0 = scmp.ne.s32.totalorder %s16_s13, %s435_s14  ;;  %p441_p2 = scmp.lt.s32.totalorder %s435_s14, %s435_s14 }
   0x6   :  { %p442_p3 = por %p441_p2, %p440_p1 }
   0x8   :  { %p443_p4 = pnand %p442_p3, %p436_p0 }
   0xa   :  { %446 = shalt.err (!%p443_p4)
}
   0xb   :  { %s472_s15 = smov 256   ;;  %s473_s16 = smov 16  }
   0xc   :  { %21 = dma.hbm_to_vmem [thread:$0]  %s595_s0, 2048, %s16_s13, [#allocation3], %s472_s15, %s472_s15, %s473_s16  }
   0xd   :  { %467 = dma.done.wait [#allocation3], 2048  }
   0xe   :  { %468 = vsyncadd [#allocation3], 4294965248  ;;  %v503_v0 = vld [vmem:[#allocation2 + $0x40] sm:$0xff]  ;;  %v505_v1 = vld [vmem:[#allocation2 + $0x48] sm:$0xff]  ;;  %v474_v24 = vmov 0.0   ;;  %vm130_vm0 = vcmask 261120   ;;  %v82_v29 = vlaneseq }
   0xf   :  { %v507_v2 = vld [vmem:[#allocation2] sm:$0xff]  ;;  %v57_v3 = vadd.f32 %v505_v1, %v503_v0  ;;  %v511_v4 = vld [vmem:[#allocation2 + $0x8] sm:$0xff]  ;;  %v513_v5 = vld [vmem:[#allocation2 + $0x50] sm:$0xff]  ;;  %401 = vmatprep.subr.mxu0 %v474_v24  ;;  %406 = vmatprep.subr.mxu1 %v474_v24  ;;  %vm475_vm1 = vmmov 0   ;;  %vm207_vm2 = vcmask 15360   ;;  %vm93_vm3 = vcmask 130112  }
  0x10   :  { %v515_v6 = vld [vmem:[#allocation2 + $0x58] sm:$0xff]  ;;  %v45_v7 = vadd.f32 %v511_v4, %v507_v2  ;;  %v519_v8 = vld [vmem:[#allocation2 + $0x10] sm:$0xff]  ;;  %v527_v12 = vld [vmem:[#allocation2 + $0x60] sm:$0xff]  ;;  %403 = vmatprep.mubr.msk.f32.mxu0 %vm475_vm1, %v474_v24  ;;  %414 = vmatprep.mubr.msk.f32.mxu1 %vm475_vm1, %v474_v24  ;;  %v83_v30 = vand.u32 127, %v82_v29  ;;  %v85_v35 = vshrl.u32 %v82_v29, 7  ;;  %vm100_vm4 = vcmask 195712  }
  0x11   :  { %v521_v9 = vld [vmem:[#allocation2 + $0x18] sm:$0xff]  ;;  %58 = vadd.xlane.f32.xlu1 %v57_v3  ;;  %v60_v10 = vadd.f32 %v515_v6, %v513_v5  ;;  %v529_v13 = vld [vmem:[#allocation2 + $0x68] sm:$0xff]  ;;  %v531_v14 = vld [vmem:[#allocation2 + $0x20] sm:$0xff]  ;;  %vm107_vm5 = vcmask 261312   ;;  %vm128_vm6 = vcmask 1041409  }
  0x12   :  { %46 = vadd.xlane.f32.xlu0 %v45_v7  ;;  %v48_v11 = vadd.f32 %v521_v9, %v519_v8  ;;  %v533_v15 = vld [vmem:[#allocation2 + $0x28] sm:$0xff]  ;;  %v63_v16 = vadd.f32 %v529_v13, %v527_v12  ;;  %v539_v18 = vld [vmem:[#allocation2 + $0x70] sm:$0xff]  ;;  %v541_v19 = vld [vmem:[#allocation2 + $0x78] sm:$0xff]  ;;  %v88_v33 = vadd.s32 4294967288, %v83_v30  ;;  %v95_v34 = vadd.s32 4294967280, %v83_v30 }
  0x13   :  { %v51_v17 = vadd.f32 %v533_v15, %v531_v14  ;;  %v543_v20 = vld [vmem:[#allocation2 + $0x30] sm:$0xff]  ;;  %v545_v21 = vld [vmem:[#allocation2 + $0x38] sm:$0xff]  ;;  %v66_v22 = vadd.f32 %v541_v19, %v539_v18  ;;  %v69_v25 = vld [vmem:[%s596_s1] sm:$0x3]  ;;  %v102_v39 = vadd.s32 4294967272, %v83_v30  ;;  %v86_v41 = vsub.s32 %v83_v30, %v85_v35 }
  0x14   :  { %v54_v23 = vadd.f32 %v545_v21, %v543_v20  ;;  %402 = vmatpush3.xpose.msk.msra.mxu0 %vm130_vm0, %v69_v25  ;;  %v73_v26 = vld [vmem:[%s597_s2 + $0x18] sm:$0xff]  ;;  %v72_v27 = vld [vmem:[%s597_s2 + $0x10] sm:$0xff]  ;;  %v71_v28 = vld [vmem:[%s597_s2 + $0x8] sm:$0xff]  ;;  %v91_v37 = vsub.s32 %v88_v33, %v85_v35  ;;  %v98_v40 = vsub.s32 %v95_v34, %v85_v35 }
  0x15   :  { %61 = vadd.xlane.f32.xlu1 %v60_v10  ;;  %407 = vmatpush3.xpose.msk.msra.mxu1 %vm207_vm2, %v73_v26  ;;  %v105_v45 = vsub.s32 %v102_v39, %v85_v35  ;;  %v70_v62 = vld [vmem:[%s597_s2] sm:$0xff]  ;;  %v320_v26 = vsub.s32 1, %v85_v35  ;;  %s476_s2 = smov [#allocation5]  }
  0x16   :  { %49 = vadd.xlane.f32.xlu0 %v48_v11  ;;  %408 = vmatprep.subr.mxu1 %v474_v24  ;;  %s374_s27 = sshll.u32 %s476_s2, 4  ;;  %s375_s27 = int_to_ptr.vmem [resolvable:$true] %s374_s27 }
  0x17   :  { %s447_s28 = scalar_lea.vmem %s375_s27, 2048  ;;  %p452_p6 = scmp.lt.s32.totalorder %s375_s27, %s375_s27 }
  0x18   :  { %p448_p5 = scmp.ne.s32.totalorder %s375_s27, %s447_s28  ;;  %p453_p7 = scmp.lt.s32.totalorder %s447_s28, %s447_s28 }
  0x19   :  { %64 = vadd.xlane.f32.xlu1 %v63_v16  ;;  %409 = vmatpush3.xpose.msk.msra.mxu1 %vm207_vm2, %v72_v27 }
  0x1a   :  { %52 = vadd.xlane.f32.xlu0 %v51_v17  ;;  %410 = vmatprep.subr.mxu1 %v474_v24  ;;  %p454_p8 = por %p453_p7, %p452_p6 }
  0x1c   :  { %p455_p9 = pnand %p454_p8, %p448_p5 }
  0x1d   :  { %67 = vadd.xlane.f32.xlu1 %v66_v22  ;;  %411 = vmatpush3.xpose.msk.msra.mxu1 %vm207_vm2, %v71_v28 }
  0x1e   :  { %55 = vadd.xlane.f32.xlu0 %v54_v23  ;;  %412 = vmatprep.subr.mxu1 %v474_v24  ;;  %v301_v23 = vsub.s32 0, %v85_v35 }
  0x21   :  { %413 = vmatpush3.xpose.msk.msra.mxu1 %vm207_vm2, %v70_v62 }
  0x9a   :  { %v59_v31 = vpop.xlane.xlu1 %58 }
  0x9b   :  { %v47_v32 = vpop.xlane.xlu0 %46  ;;  %v112_v48 = vrot.slane %v59_v31, %v86_v41 }
  0x9c   :  { %v87_v50 = vrot.slane %v47_v32, %v86_v41 }
  0x9e   :  { %v62_v36 = vpop.xlane.xlu1 %61 }
  0x9f   :  { %v50_v38 = vpop.xlane.xlu0 %49  ;;  %v116_v43 = vrot.slane %v62_v36, %v91_v37 }
  0xa0   :  { %v92_v46 = vrot.slane %v50_v38, %v91_v37 }
  0xa1   :  { %v117_v52 = vsel %vm93_vm3, %v116_v43, %v112_v48 }
  0xa2   :  { %v65_v42 = vpop.xlane.xlu1 %64  ;;  %v94_v55 = vsel %vm93_vm3, %v92_v46, %v87_v50 }
  0xa3   :  { %v53_v44 = vpop.xlane.xlu0 %52  ;;  %v121_v47 = vrot.slane %v65_v42, %v98_v40 }
  0xa4   :  { %v99_v49 = vrot.slane %v53_v44, %v98_v40 }
  0xa5   :  { %v122_v56 = vsel %vm100_vm4, %v121_v47, %v117_v52 }
  0xa6   :  { %v68_v51 = vpop.xlane.xlu1 %67  ;;  %v101_v58 = vsel %vm100_vm4, %v99_v49, %v94_v55 }
  0xa7   :  { %v126_v53 = vrot.slane %v68_v51, %v105_v45  ;;  %v56_v54 = vpop.xlane.xlu0 %55 }
  0xa8   :  { %v106_v57 = vrot.slane %v56_v54, %v105_v45 }
  0xa9   :  { %v127_v59 = vsel %vm107_vm5, %v126_v53, %v122_v56 }
  0xaa   :  { %v108_v60 = vsel %vm107_vm5, %v106_v57, %v101_v58 }
  0xab   :  { %v129_v61 = vsel %vm128_vm6, %v127_v59, %v108_v60 }
  0xac   :  { %404 = vmatmul.mubr.msk.f32.vlgmr.msra.gmra.mxu0 %vm130_vm0, %v129_v61 }
 0x16c   :  { %v202_v63 = vpop.f32.mrf.mxu0 }
 0x16d   :  { %v206_v3 = vmax.f32 %v202_v63, 0.0 }
 0x16e   :  { %v405_v7 = vpop.f32.mrf.mxu0 }
 0x16f   :  { %415 = vmatmul.mubr.msk.f32.vlgmr.msra.gmra.mxu1 %vm207_vm2, %v206_v3 }
 0x22f   :  { %v289_v10 = vpop.f32.mrf.mxu1 }
 0x230   :  { %v393_v11 = vmul.f32 -1.442695, %v289_v10 }
 0x231   :  { %v416_v16 = vpop.f32.mrf.mxu1 }
 0x232   :  { %423 = vpow2.f32 %v393_v11 }
 0x23f   :  { %v424_v17 = vpop.eup %423 }
 0x240   :  { %v296_v22 = vadd.f32 1.0, %v424_v17 }
 0x242   :  { %425 = vrcp.f32 %v296_v22 }
 0x24f   :  { %v426_v24 = vpop.eup %425 }
 0x250   :  { %v302_v25 = vrot.slane %v426_v24, %v301_v23  ;;  %v321_v27 = vrot.slane %v426_v24, %v320_v26 }
 0x252   :  { %308 = vbcast.lane.b32.xlu1 %v302_v25, 264  ;;  %304 = vbcast.lane.b32.xlu0 %v302_v25, 256 }
 0x256   :  { %312 = vbcast.lane.b32.xlu1 %v302_v25, 272  ;;  %323 = vbcast.lane.b32.xlu0 %v321_v27, 256 }
 0x25a   :  { %316 = vbcast.lane.b32.xlu1 %v302_v25, 280  ;;  %331 = vbcast.lane.b32.xlu0 %v321_v27, 272 }
 0x25e   :  { %327 = vbcast.lane.b32.xlu1 %v321_v27, 264 }
 0x262   :  { %335 = vbcast.lane.b32.xlu1 %v321_v27, 280 }
 0x2c4   :  { %v309_v28 = vpop.permute.xlu1 %308  ;;  %v305_v29 = vpop.permute.xlu0 %304 }
 0x2c5   :  { %v339_v30 = vmul.f32 %v309_v28, %v519_v8  ;;  %v340_v31 = vmul.f32 %v309_v28, %v521_v9  ;;  %v337_v32 = vmul.f32 %v305_v29, %v507_v2  ;;  %v338_v33 = vmul.f32 %v305_v29, %v511_v4 }
 0x2c7   :  { %355 = vst [vmem:[#allocation5 + $0x10] sm:$0xff] %v339_v30  ;;  %356 = vst [vmem:[#allocation5 + $0x18] sm:$0xff] %v340_v31 }
 0x2c8   :  { %353 = vst [vmem:[#allocation5] sm:$0xff] %v337_v32  ;;  %354 = vst [vmem:[#allocation5 + $0x8] sm:$0xff] %v338_v33  ;;  %v313_v34 = vpop.permute.xlu1 %312  ;;  %v324_v35 = vpop.permute.xlu0 %323 }
 0x2c9   :  { %v341_v36 = vmul.f32 %v313_v34, %v531_v14  ;;  %v342_v37 = vmul.f32 %v313_v34, %v533_v15  ;;  %v345_v38 = vmul.f32 %v324_v35, %v503_v0  ;;  %v346_v8 = vmul.f32 %v324_v35, %v505_v1 }
 0x2cb   :  { %357 = vst [vmem:[#allocation5 + $0x20] sm:$0xff] %v341_v36  ;;  %358 = vst [vmem:[#allocation5 + $0x28] sm:$0xff] %v342_v37 }
 0x2cc   :  { %361 = vst [vmem:[#allocation5 + $0x40] sm:$0xff] %v345_v38  ;;  %362 = vst [vmem:[#allocation5 + $0x48] sm:$0xff] %v346_v8  ;;  %v317_v2 = vpop.permute.xlu1 %316  ;;  %v332_v4 = vpop.permute.xlu0 %331 }
 0x2cd   :  { %v343_v9 = vmul.f32 %v317_v2, %v543_v20  ;;  %v344_v39 = vmul.f32 %v317_v2, %v545_v21  ;;  %v349_v40 = vmul.f32 %v332_v4, %v527_v12  ;;  %v350_v14 = vmul.f32 %v332_v4, %v529_v13 }
 0x2cf   :  { %359 = vst [vmem:[#allocation5 + $0x30] sm:$0xff] %v343_v9  ;;  %360 = vst [vmem:[#allocation5 + $0x38] sm:$0xff] %v344_v39 }
 0x2d0   :  { %365 = vst [vmem:[#allocation5 + $0x60] sm:$0xff] %v349_v40  ;;  %366 = vst [vmem:[#allocation5 + $0x68] sm:$0xff] %v350_v14  ;;  %v328_v0 = vpop.permute.xlu1 %327 }
 0x2d1   :  { %v347_v1 = vmul.f32 %v328_v0, %v513_v5  ;;  %v348_v15 = vmul.f32 %v328_v0, %v515_v6 }
 0x2d3   :  { %363 = vst [vmem:[#allocation5 + $0x50] sm:$0xff] %v347_v1  ;;  %364 = vst [vmem:[#allocation5 + $0x58] sm:$0xff] %v348_v15 }
 0x2d4   :  { %v336_v20 = vpop.permute.xlu1 %335 }
 0x2d5   :  { %v351_v21 = vmul.f32 %v336_v20, %v539_v18  ;;  %v352_v12 = vmul.f32 %v336_v20, %v541_v19 }
 0x2d7   :  { %367 = vst [vmem:[#allocation5 + $0x70] sm:$0xff] %v351_v21  ;;  %368 = vst [vmem:[#allocation5 + $0x78] sm:$0xff] %v352_v12 }
 0x2d8   :  { %458 = shalt.err (!%p455_p9)
}
 0x2d9   :  { %380 = dma.vmem_to_hbm [thread:$0]  %s375_s27, 2048, %s598_s3, [#allocation4], %s472_s15, %s472_s15, %s473_s16  }
 0x2da   :  { %469 = dma.done.wait [#allocation4], 2048  }
 0x2db   :  { %470 = vsyncadd [#allocation4], 4294965248 }
 0x2dc   :  { %384 = vsyncpa [#allocation3], 1 }
 0x2dd   :  { %385 = vsyncpa [#allocation4], 1 }

</bundles_post_ra>
